<compile_context>
chip_gen: v6e
topology: v6e:2x2x1
jax: 0.10.0
libtpu: 0.0.40
codegen_flags: <defaults>
</compile_context>

<pallas_src>
import functools

import jax
import jax.numpy as jnp
from jax.experimental import pallas as pl
from jax.experimental.pallas import tpu as pltpu

LANE = 128


@functools.lru_cache(maxsize=1)
def _tpu_core_config():
    """Best-effort (core_split, max_tile_rows).

    Conservative single-TensorCore defaults (split=1, 1024-row tiles) unless a v7x-class
    multi-TC chip is positively identified, in which case use 2 cores and 2048-row tiles
    (~7 MiB VMEM total, well inside v7x's 32 MiB scoped default).
    """
    core_split, max_tile_rows = 1, 1024
    try:
        kind = (getattr(jax.devices()[0], "device_kind", "") or "").lower()
        if "v7" in kind or "7x" in kind:
            core_split, max_tile_rows = 2, 2048
    except Exception:
        pass
    return core_split, max_tile_rows


def _unified_loss_kernel(o_ref, q_ref, r_ref, acc_ref):
    """acc += o * (Q*o + R).

    acc_ref is the output block of the current core; its block index depends only on the
    leading (per-core) grid axis, so it stays resident in VMEM across the reduction axis and
    acts as a lane-dense vreg accumulator.  The scalar reduction happens once in the wrapper.
    """
    @pl.when(pl.program_id(1) == 0)
    def _():
        acc_ref[...] = jnp.zeros_like(acc_ref)

    o = o_ref[...]
    acc_ref[...] += o * (q_ref[...] * o + r_ref[...])


@functools.partial(jax.jit, static_argnums=(6, 7))
def _fused_forward(terms, coefs, offs, logit_keep, mse_leak, total_multiplier,
                   core_split, max_tile_rows):
    """All (level, branch) terms of the unified loss in a single pallas_call.

    terms : tuple of (o, om, ol, gt_img, sq_gt_img, w_img) dense arrays (any shapes).
    coefs : (n_terms,) f32   = local_multiplier[dd] * (1/alpha)**d          (traced)
    offs  : (n_terms,) f32   = logit_leak / num_not_none                    (traced)
    logit_keep, mse_leak, total_multiplier : traced f32 scalars.
    core_split, max_tile_rows : static per-device tiling config.
    """
    one_m_msl = 1.0 - mse_leak
    o_parts, q_parts, r_parts = [], [], []
    p_sum = jnp.zeros((), jnp.float32)
    total = 0
    for t, (o, om, ol, gt, sq, w) in enumerate(terms):
        o_f = o.reshape(-1).astype(jnp.float32)
        om_f = om.reshape(-1).astype(jnp.float32)
        ol_f = ol.reshape(-1).astype(jnp.float32)
        gt_f = gt.reshape(-1).astype(jnp.float32)
        sq_f = sq.reshape(-1).astype(jnp.float32)
        w_f = w.reshape(-1).astype(jnp.float32)

        # Modified logits on their support, folded with weights and the per-term coefficient.
        ol_mod = jnp.where(om_f != 0.0, ol_f * logit_keep + offs[t], 0.0)
        c = ol_mod * (w_f * coefs[t])
        q = one_m_msl * c                      # multiplies o^2 in the kernel
        r = (-2.0) * gt_f * om_f * q           # multiplies o   in the kernel
        p = sq_f * om_f * q + mse_leak * c     # o-independent part: reduce here (fuses into prep)

        p_sum = p_sum + jnp.sum(p)
        o_parts.append(o_f)
        q_parts.append(q)
        r_parts.append(r)
        total += o_f.shape[0]

    # Static tiling decisions (shapes known at trace time): minimal padding, tiles <= budget.
    rows_needed = -(-total // LANE)
    split = core_split if rows_needed >= core_split * 8 else 1
    per_core_rows = -(-rows_needed // split)
    tiles_per = max(1, -(-per_core_rows // max_tile_rows))
    base_rows = -(-per_core_rows // tiles_per)
    tile_rows = max(8, -(-base_rows // 8) * 8)
    padded_rows = split * tiles_per * tile_rows
    pad = padded_rows * LANE - total

    # TODO(synk): optionally ship Q/R slabs as bfloat16 (halves their HBM bytes) once the
    # resulting loss error has been validated against the required tolerance.
    def slab(parts):
        if pad > 0:
            parts = parts + [jnp.zeros((pad,), jnp.float32)]
        return jnp.concatenate(parts).reshape(padded_rows, LANE)

    o_s = slab(o_parts)
    q_s = slab(q_parts)
    r_s = slab(r_parts)

    in_spec = pl.BlockSpec((tile_rows, LANE), lambda c, i: (c * tiles_per + i, 0))
    if split >= 2:
        dim_sem = (pltpu.CORE_PARALLEL, pltpu.ARBITRARY)   # real cross-TC sharding on v7x
    else:
        dim_sem = ("arbitrary", "arbitrary")               # single-TC: plain sequential loop

    acc = pl.pallas_call(
        _unified_loss_kernel,
        out_shape=jax.ShapeDtypeStruct((split * tile_rows, LANE), jnp.float32),
        grid=(split, tiles_per),
        in_specs=[in_spec] * 3,
        out_specs=pl.BlockSpec((tile_rows, LANE), lambda c, i: (c, 0)),
        compiler_params=pltpu.CompilerParams(dimension_semantics=dim_sem),
    )(o_s, q_s, r_s)

    total_loss = (jnp.sum(acc) + p_sum).reshape(1)
    return total_loss / total_multiplier


class SparseUnifiedOutputLoss:
    """JAX/Pallas port of the PyTorch SparseUnifiedOutputLoss forward pass."""

    def __init__(self, dims=2, unified_alpha=0.9, mse_leak=0.0, track_partial_losses=True):
        self.dims = dims
        self.is_3d = dims == 3
        self.alpha = unified_alpha
        self.mse_leak = mse_leak
        self.track_partial_losses = track_partial_losses
        self.last_partial_losses = None
        # torch.nn.MSELoss criterion is constructed by the original module but never used.

    def forward(self, unified_loss_data, image_pyramids, gts, gt_masks, logit_leak=0.5):
        prev_outputs = unified_loss_data['prev_outputs']
        prev_masks = unified_loss_data['prev_masks']
        prev_logits = unified_loss_data['prev_logits']
        this_outputs = unified_loss_data['this_outputs']
        this_masks = unified_loss_data['this_masks']
        this_logits = unified_loss_data['this_logits']
        next_outputs = unified_loss_data['next_outputs']
        next_masks = unified_loss_data['next_masks']
        next_logits = unified_loss_data['next_logits']

        image_pyramid = image_pyramids[0]
        sq_image_pyramid = image_pyramids[1]
        weight_pyramid = image_pyramids[2]
        if len(this_outputs) != len(image_pyramid) or len(image_pyramid) != len(sq_image_pyramid):
            raise RuntimeError(
                'SparseUnifiedOutputLoss: mismatched input lengths %d, %d, %d'
                % (len(this_outputs), len(image_pyramid), len(sq_image_pyramid)))

        multiplier = 2.0 ** (len(this_outputs) - 1)
        total_multiplier = 0.0
        terms, coefs, offs = [], [], []
        for d, (_gt, _gtm) in enumerate(zip(gts, gt_masks)):
            num_not_none = sum(
                1.0 for x in (prev_outputs[d], this_outputs[d], next_outputs[d]) if x is not None)
            if num_not_none < 2.0:
                raise RuntimeError(
                    'SparseUnifiedOutputLoss: unexpected num_not_none = ' + str(num_not_none))
            for dd in (0, 1, 2):
                o = [prev_outputs[d], this_outputs[d], next_outputs[d]][dd]
                if o is None:
                    continue
                om = [prev_masks[d], this_masks[d], next_masks[d]][dd]
                ol = [prev_logits[d], this_logits[d], next_logits[d]][dd]
                local_multiplier = [self.alpha, 1.0, 1.0 / self.alpha][dd]
                terms.append((o, om, ol,
                              image_pyramid[d + dd - 1],
                              sq_image_pyramid[d + dd - 1],
                              weight_pyramid[d + dd - 1]))
                coefs.append(float(local_multiplier * (1.0 / self.alpha) ** d))
                offs.append(float(logit_leak / num_not_none))
            total_multiplier += multiplier ** self.dims
            multiplier /= 2.0

        core_split, max_tile_rows = _tpu_core_config()
        # All numeric parameters are traced (no recompile when logit_leak / mse_leak / alpha change).
        # TODO(synk): self.last_partial_losses tracking (detached per-branch partial sums) is a
        # Python-side side-effect of the torch module and is not computed here.
        return _fused_forward(tuple(terms),
                              jnp.asarray(coefs, jnp.float32),
                              jnp.asarray(offs, jnp.float32),
                              jnp.asarray(1.0 - logit_leak, jnp.float32),
                              jnp.asarray(self.mse_leak, jnp.float32),
                              jnp.asarray(total_multiplier, jnp.float32),
                              core_split, max_tile_rows)

    __call__ = forward

    def get_last_partial_losses(self):
        return self.last_partial_losses


# ---------------------------------------------------------------------------
# Pure-JAX reference (direct dense translation of the torch code) and test driver
# ---------------------------------------------------------------------------

def _reference_forward(unified, image_pyramids, gts, gt_masks, *, dims, alpha, mse_leak, logit_leak):
    image_pyramid, sq_pyr, w_pyr = image_pyramids
    prev_o, this_o, next_o = unified['prev_outputs'], unified['this_outputs'], unified['next_outputs']
    prev_m, this_m, next_m = unified['prev_masks'], unified['this_masks'], unified['next_masks']
    prev_l, this_l, next_l = unified['prev_logits'], unified['this_logits'], unified['next_logits']
    total_loss = jnp.zeros((1,), jnp.float32)
    total_multiplier = 0.0
    multiplier = 2.0 ** (len(this_o) - 1)
    for d, _ in enumerate(zip(gts, gt_masks)):
        l = jnp.zeros((1,), jnp.float32)
        num_not_none = sum(1.0 for x in (prev_o[d], this_o[d], next_o[d]) if x is not None)
        for dd in (0, 1, 2):
            o = [prev_o[d], this_o[d], next_o[d]][dd]
            if o is None:
                continue
            om = [prev_m[d], this_m[d], next_m[d]][dd]
            ol = [prev_l[d], this_l[d], next_l[d]][dd]
            local_mult = [alpha, 1.0, 1.0 / alpha][dd]
            gt_img = image_pyramid[d + dd - 1]
            sq_img = sq_pyr[d + dd - 1]
            w_img = w_pyr[d + dd - 1]
            sel_gt = gt_img * om
            sel_sq = sq_img * om
            ol_mod = jnp.where(om != 0.0, ol * (1.0 - logit_leak) + logit_leak / num_not_none, 0.0)
            ll = jnp.sum(((sel_sq + o * o - 2.0 * sel_gt * o) * (1.0 - mse_leak) * ol_mod
                          + ol_mod * mse_leak) * w_img) * local_mult
            l = l + ll
        total_loss = total_loss + l * (1.0 / alpha) ** d
        total_multiplier += multiplier ** dims
        multiplier /= 2.0
    return total_loss / total_multiplier


def _build_inputs(key, batch, channels, spatial_sizes):
    """Deterministic dense stand-ins for the sparse pyramid / unified_loss_data inputs."""
    L = len(spatial_sizes)
    shapes = [(batch, channels, s, s) for s in spatial_sizes]

    image_pyr, sq_pyr, w_pyr = [], [], []
    for shp in shapes:
        key, k1, k2, k3 = jax.random.split(key, 4)
        gt = jax.random.uniform(k1, shp, jnp.float32)
        w_support = (jax.random.uniform(k2, shp) > 0.3).astype(jnp.float32)
        w = w_support * (0.5 + jax.random.uniform(k3, shp, jnp.float32))
        image_pyr.append(gt)
        sq_pyr.append(gt * gt)
        w_pyr.append(w)

    def branch(bkey, shp):
        k1, k2, k3 = jax.random.split(bkey, 3)
        mask = (jax.random.uniform(k1, shp) > 0.4).astype(jnp.float32)
        out = mask * jax.random.normal(k2, shp, jnp.float32)
        logit = mask * jax.random.uniform(k3, shp, jnp.float32)
        return mask, out, logit

    prev_o, prev_m, prev_l = [None] * L, [None] * L, [None] * L
    this_o, this_m, this_l = [None] * L, [None] * L, [None] * L
    next_o, next_m, next_l = [None] * L, [None] * L, [None] * L
    for d in range(L):
        key, kt = jax.random.split(key)
        this_m[d], this_o[d], this_l[d] = branch(kt, shapes[d])
        if d >= 1:
            key, kp = jax.random.split(key)
            prev_m[d], prev_o[d], prev_l[d] = branch(kp, shapes[d - 1])
        if d <= L - 2:
            key, kn = jax.random.split(key)
            next_m[d], next_o[d], next_l[d] = branch(kn, shapes[d + 1])

    unified = dict(prev_outputs=prev_o, prev_masks=prev_m, prev_logits=prev_l,
                   this_outputs=this_o, this_masks=this_m, this_logits=this_l,
                   next_outputs=next_o, next_masks=next_m, next_logits=next_l)
    gts = list(image_pyr)      # only their length is used by the loss (as in the torch module)
    gt_masks = list(this_m)
    return unified, (image_pyr, sq_pyr, w_pyr), gts, gt_masks


if __name__ == "__main__":
    configs = [
        # small config (single tile, single grid step)
        dict(batch=2, channels=1, spatial=[16, 8, 4], mse_leak=0.0, logit_leak=0.5),
        # larger config exercises multi-tile accumulation and the padding-minimising tiling
        dict(batch=2, channels=4, spatial=[128, 64, 32], mse_leak=0.1, logit_leak=0.3),
    ]
    key = jax.random.PRNGKey(0)
    for cfg in configs:
        key, sub = jax.random.split(key)
        unified, pyramids, gts, gt_masks = _build_inputs(
            sub, cfg['batch'], cfg['channels'], cfg['spatial'])

        loss_mod = SparseUnifiedOutputLoss(dims=2, unified_alpha=0.9, mse_leak=cfg['mse_leak'])
        loss = loss_mod(unified, pyramids, gts, gt_masks, logit_leak=cfg['logit_leak'])
        loss = jax.block_until_ready(loss)

        ref = _reference_forward(unified, pyramids, gts, gt_masks, dims=2, alpha=0.9,
                                 mse_leak=cfg['mse_leak'], logit_leak=cfg['logit_leak'])
        ref = jax.block_until_ready(ref)

        assert loss.shape == (1,) and loss.dtype == jnp.float32
        assert jnp.allclose(loss, ref, rtol=2e-4, atol=1e-4), (cfg, loss, ref)

    print("KERNEL_OK")
</pallas_src>

<mosaic_0001>
module attributes {stable_mosaic.version = 11 : i64} {
  func.func @_unified_loss_kernel(%arg0: i32, %arg1: i32, %arg2: memref<16x128xf32, #tpu.memory_space<vmem>>, %arg3: memref<16x128xf32, #tpu.memory_space<vmem>>, %arg4: memref<16x128xf32, #tpu.memory_space<vmem>>, %arg5: memref<16x128xf32, #tpu.memory_space<vmem>>) attributes {dimension_semantics = [#tpu.dimension_semantics<arbitrary>, #tpu.dimension_semantics<arbitrary>], iteration_bounds = array<i64: 1, 1>, scalar_prefetch = 0 : i64, scratch_operands = 0 : i64, tpu.core_type = #tpu.core_type<tc>, window_params = [{transform_indices = @transform_0, window_bounds = array<i64: 16, 128>}, {transform_indices = @transform_1, window_bounds = array<i64: 16, 128>}, {transform_indices = @transform_2, window_bounds = array<i64: 16, 128>}, {transform_indices = @transform_3, window_bounds = array<i64: 16, 128>}]} {
    %c0_i32 = arith.constant 0 : i32
    %0 = arith.cmpi eq, %arg1, %c0_i32 : i32
    %1 = arith.extui %0 : i1 to i32
    %c0_i32_0 = arith.constant 0 : i32
    %2 = arith.cmpi ne, %1, %c0_i32_0 : i32
    scf.if %2 {
      %cst = arith.constant 0.000000e+00 : f32
      %12 = vector.broadcast %cst : f32 to vector<16x128xf32>
      %c0_10 = arith.constant 0 : index
      %c0_11 = arith.constant 0 : index
      %13 = vector.load %arg5[%c0_10, %c0_11] : memref<16x128xf32, #tpu.memory_space<vmem>>, vector<16x128xf32>
      tpu.vector_store %arg5[%c0_10, %c0_11], %12 {strides = array<i32>} : memref<16x128xf32, #tpu.memory_space<vmem>>, vector<16x128xf32>,
    } else {
    }
    %c0 = arith.constant 0 : index
    %c0_1 = arith.constant 0 : index
    %3 = vector.load %arg2[%c0, %c0_1] : memref<16x128xf32, #tpu.memory_space<vmem>>, vector<16x128xf32>
    %c0_2 = arith.constant 0 : index
    %c0_3 = arith.constant 0 : index
    %4 = vector.load %arg5[%c0_2, %c0_3] : memref<16x128xf32, #tpu.memory_space<vmem>>, vector<16x128xf32>
    %c0_4 = arith.constant 0 : index
    %c0_5 = arith.constant 0 : index
    %5 = vector.load %arg3[%c0_4, %c0_5] : memref<16x128xf32, #tpu.memory_space<vmem>>, vector<16x128xf32>
    %6 = arith.mulf %5, %3 : vector<16x128xf32>
    %c0_6 = arith.constant 0 : index
    %c0_7 = arith.constant 0 : index
    %7 = vector.load %arg4[%c0_6, %c0_7] : memref<16x128xf32, #tpu.memory_space<vmem>>, vector<16x128xf32>
    %8 = arith.addf %6, %7 : vector<16x128xf32>
    %9 = arith.mulf %3, %8 : vector<16x128xf32>
    %10 = arith.addf %4, %9 : vector<16x128xf32>
    %c0_8 = arith.constant 0 : index
    %c0_9 = arith.constant 0 : index
    %11 = vector.load %arg5[%c0_8, %c0_9] : memref<16x128xf32, #tpu.memory_space<vmem>>, vector<16x128xf32>
    tpu.vector_store %arg5[%c0_8, %c0_9], %10 {strides = array<i32>} : memref<16x128xf32, #tpu.memory_space<vmem>>, vector<16x128xf32>,
    return
  }
  func.func @transform_0(%arg0: i32, %arg1: i32) -> (i32, i32) {
    %c1_i32 = arith.constant 1 : i32
    %0 = arith.muli %arg0, %c1_i32 : i32
    %1 = arith.addi %0, %arg1 : i32
    %c0_i32 = arith.constant 0 : i32
    %c0_i32_0 = arith.constant 0 : i32
    return %1, %c0_i32 : i32, i32
  }
  func.func @transform_1(%arg0: i32, %arg1: i32) -> (i32, i32) {
    %c1_i32 = arith.constant 1 : i32
    %0 = arith.muli %arg0, %c1_i32 : i32
    %1 = arith.addi %0, %arg1 : i32
    %c0_i32 = arith.constant 0 : i32
    %c0_i32_0 = arith.constant 0 : i32
    return %1, %c0_i32 : i32, i32
  }
  func.func @transform_2(%arg0: i32, %arg1: i32) -> (i32, i32) {
    %c1_i32 = arith.constant 1 : i32
    %0 = arith.muli %arg0, %c1_i32 : i32
    %1 = arith.addi %0, %arg1 : i32
    %c0_i32 = arith.constant 0 : i32
    %c0_i32_0 = arith.constant 0 : i32
    return %1, %c0_i32 : i32, i32
  }
  func.func @transform_3(%arg0: i32, %arg1: i32) -> (i32, i32) {
    %c0_i32 = arith.constant 0 : i32
    %c0_i32_0 = arith.constant 0 : i32
    return %arg0, %c0_i32 : i32, i32
  }
}

</mosaic_0001>

<bundles_post_ra>
// kernel: mul.191
= control target key start
LH: loop header
LB: loop body
LE: loop exit
PB: predicated region body
PF: predicated region fallthrough
CT: control target
= control target key end

     0   :  { %s34_s0 = inlined_call_operand.vmem [shape: f32[32], index: 0, kind: input, shape index: {}]   ;;  %s35_s1 = inlined_call_operand.vmem [shape: f32[32], index: 1, kind: input, shape index: {}]   ;;  %s36_s2 = inlined_call_operand.vmem [shape: f32[32], index: 2, kind: output, shape index: {}]  }
   0x1   :  { %v3_v0 = vld [vmem:[%s34_s0] sm:$0x1] }
   0x2   :  { %v4_v1 = vld [vmem:[%s35_s1] sm:$0x1] }
   0x3   :  { %v7_v2 = vmul.f32 %v4_v1, %v3_v0 }
   0x5   :  { %9 = vst [vmem:[%s36_s2] sm:$0x1] %v7_v2 }

// kernel: mul.121
= control target key start
LH: loop header
LB: loop body
LE: loop exit
PB: predicated region body
PF: predicated region fallthrough
CT: control target
= control target key end

     0   :  { %s34_s0 = inlined_call_operand.vmem [shape: f32[128], index: 0, kind: input, shape index: {}]   ;;  %s35_s1 = inlined_call_operand.vmem [shape: f32[128], index: 1, kind: input, shape index: {}]   ;;  %s36_s2 = inlined_call_operand.vmem [shape: f32[128], index: 2, kind: output, shape index: {}]  }
   0x1   :  { %v3_v0 = vld [vmem:[%s34_s0] sm:$0x1] }
   0x2   :  { %v4_v1 = vld [vmem:[%s35_s1] sm:$0x1] }
   0x3   :  { %v7_v2 = vmul.f32 %v4_v1, %v3_v0 }
   0x5   :  { %9 = vst [vmem:[%s36_s2] sm:$0x1] %v7_v2 }

// kernel: mul.135
= control target key start
LH: loop header
LB: loop body
LE: loop exit
PB: predicated region body
PF: predicated region fallthrough
CT: control target
= control target key end

     0   :  { %s34_s0 = inlined_call_operand.vmem [shape: f32[512], index: 0, kind: input, shape index: {}]   ;;  %s35_s1 = inlined_call_operand.vmem [shape: f32[512], index: 1, kind: input, shape index: {}]   ;;  %s36_s2 = inlined_call_operand.vmem [shape: f32[512], index: 2, kind: output, shape index: {}]  }
   0x1   :  { %v3_v0 = vld [vmem:[%s34_s0] sm:$0xf] }
   0x2   :  { %v4_v1 = vld [vmem:[%s35_s1] sm:$0xf] }
   0x3   :  { %v7_v2 = vmul.f32 %v4_v1, %v3_v0 }
   0x5   :  { %9 = vst [vmem:[%s36_s2] sm:$0xf] %v7_v2 }

// kernel: _fused_forward.1
= control target key start
LH: loop header
LB: loop body
LE: loop exit
PB: predicated region body
PF: predicated region fallthrough
CT: control target
= control target key end

     0   :  { %s171_s0 = inlined_call_operand.vmem [shape: f32[16,128], index: 0, kind: input, shape index: {}]   ;;  %s172_s1 = inlined_call_operand.vmem [shape: f32[16,128], index: 1, kind: input, shape index: {}]   ;;  %s173_s2 = inlined_call_operand.vmem [shape: f32[16,128], index: 2, kind: input, shape index: {}]   ;;  %s174_s3 = inlined_call_operand.vmem [shape: f32[16,128], index: 3, kind: output, shape index: {}]  }
   0x1   :  { %v86_v0 = vld [vmem:[%s171_s0] sm:$0xff]  ;;  %v87_v4 = vld [vmem:[%s171_s0 + $0x8] sm:$0xff] }
   0x2   :  { %v90_v1 = vld [vmem:[%s172_s1] sm:$0xff]  ;;  %v91_v5 = vld [vmem:[%s172_s1 + $0x8] sm:$0xff] }
   0x3   :  { %v94_v2 = vld [vmem:[%s173_s2] sm:$0xff]  ;;  %v92_v3 = vmul.f32 %v90_v1, %v86_v0  ;;  %v95_v6 = vld [vmem:[%s173_s2 + $0x8] sm:$0xff]  ;;  %v93_v7 = vmul.f32 %v91_v5, %v87_v4 }
   0x5   :  { %v96_v8 = vadd.f32 %v94_v2, %v92_v3  ;;  %v97_v9 = vadd.f32 %v95_v6, %v93_v7 }
   0x7   :  { %v98_v10 = vmul.f32 %v96_v8, %v86_v0  ;;  %v99_v11 = vmul.f32 %v97_v9, %v87_v4 }
   0x9   :  { %102 = vst [vmem:[%s174_s3] sm:$0xff] %v98_v10  ;;  %103 = vst [vmem:[%s174_s3 + $0x8] sm:$0xff] %v99_v11 }

</bundles_post_ra>
